<compile_context>
chip_gen: v7x
topology: tpu7x:2x2x1
jax: 0.10.0
libtpu: 0.0.40
codegen_flags: <defaults>
</compile_context>

<pallas_src>
import functools

import jax
import jax.numpy as jnp
from jax.experimental import pallas as pl
from jax.experimental.pallas import tpu as pltpu

# Scoped-VMEM budget: > v5e's 16 MiB default, < v7x's 64 MiB physical.
_VMEM_LIMIT = 32 * 1024 * 1024


def _round_up(n, m):
    return ((n + m - 1) // m) * m


def _gcn_tiling(n, tm_target, tk_target):
    """Pick (n_pad, tm, tk).  Small graphs get whole-array blocks (grid (1,1));
    larger graphs are padded to a multiple of the tiles.  When tiled, TK must be
    a multiple of 128 (lane dim) and TM a multiple of 8 (sublane dim)."""
    if n <= tm_target and n <= tk_target:
        return n, n, n
    assert tm_target % 8 == 0 and tk_target % 128 == 0
    assert max(tm_target, tk_target) % min(tm_target, tk_target) == 0
    n_pad = _round_up(n, max(tm_target, tk_target))
    return n_pad, tm_target, tk_target


# --------------------------------------------------------------------------
# Kernel 1: per-node feature transform  o = x @ W   (bf16 in, f32 acc)
# --------------------------------------------------------------------------
def _transform_kernel(x_ref, w_ref, o_ref):
    o_ref[...] = jnp.dot(
        x_ref[...], w_ref[...], preferred_element_type=jnp.float32
    ).astype(o_ref.dtype)


def _transform(x, w, *, tm, out_dtype):
    n_pad, f_in = x.shape
    f_out = w.shape[1]
    return pl.pallas_call(
        _transform_kernel,
        out_shape=jax.ShapeDtypeStruct((n_pad, f_out), out_dtype),
        grid=(n_pad // tm,),
        in_specs=[
            pl.BlockSpec((tm, f_in), lambda i: (i, 0)),
            pl.BlockSpec((f_in, f_out), lambda i: (0, 0)),
        ],
        out_specs=pl.BlockSpec((tm, f_out), lambda i: (i, 0)),
        compiler_params=pltpu.CompilerParams(
            dimension_semantics=("parallel",),
            vmem_limit_bytes=_VMEM_LIMIT,
        ),
    )(x, w)


# --------------------------------------------------------------------------
# Kernel 2: graph propagation  o = epilogue(a_hat @ h + b)
#   a_hat tiled (TM, TK), h streamed per-K-block, f32 accumulator scratch.
# --------------------------------------------------------------------------
def _propagate_kernel(a_ref, h_ref, b_ref, o_ref, acc_ref, *, epilogue):
    k = pl.program_id(1)

    @pl.when(k == 0)
    def _():
        acc_ref[...] = jnp.zeros_like(acc_ref)

    acc_ref[...] += jnp.dot(
        a_ref[...], h_ref[...], preferred_element_type=jnp.float32
    )

    @pl.when(k == pl.num_programs(1) - 1)
    def _():
        y = acc_ref[...] + b_ref[...]  # bias folded into the f32 epilogue
        if epilogue == "relu":
            y = jnp.maximum(y, 0.0)
        elif epilogue == "log_softmax":
            m = jnp.max(y, axis=1, keepdims=True)
            y = y - (m + jnp.log(jnp.sum(jnp.exp(y - m), axis=1, keepdims=True)))
        o_ref[...] = y.astype(o_ref.dtype)


def _propagate(a, h, b, *, tm, tk, epilogue, out_dtype):
    n_pad = a.shape[0]
    f = h.shape[1]
    kernel = functools.partial(_propagate_kernel, epilogue=epilogue)
    return pl.pallas_call(
        kernel,
        out_shape=jax.ShapeDtypeStruct((n_pad, f), out_dtype),
        grid=(n_pad // tm, n_pad // tk),
        in_specs=[
            pl.BlockSpec((tm, tk), lambda i, k: (i, k)),   # a_hat tile
            pl.BlockSpec((tk, f), lambda i, k: (k, 0)),    # xW K-slice
            pl.BlockSpec((1, f), lambda i, k: (0, 0)),     # bias (tiny)
        ],
        out_specs=pl.BlockSpec((tm, f), lambda i, k: (i, 0)),
        scratch_shapes=[pltpu.VMEM((tm, f), jnp.float32)],
        compiler_params=pltpu.CompilerParams(
            dimension_semantics=("parallel", "arbitrary"),
            vmem_limit_bytes=_VMEM_LIMIT,
        ),
    )(a, h, b)


# --------------------------------------------------------------------------
# Full forward pass
# --------------------------------------------------------------------------
def gcn_forward(x, a_hat, w1, b1, w2, b2, *, tm_target=256, tk_target=512):
    n = x.shape[0]
    n_pad, tm, tk = _gcn_tiling(n, tm_target, tk_target)

    # bf16 matmul operands (halves a_hat HBM traffic, 2x MXU throughput on
    # v6e/v7x); f32 accumulation keeps numerics.
    xb = x.astype(jnp.bfloat16)
    ab = a_hat.astype(jnp.bfloat16)
    if n_pad != n:
        xb = jnp.pad(xb, ((0, n_pad - n), (0, 0)))
        ab = jnp.pad(ab, ((0, n_pad - n), (0, n_pad - n)))
    w1b = w1.astype(jnp.bfloat16)
    w2b = w2.astype(jnp.bfloat16)
    b1f = jnp.asarray(b1, jnp.float32).reshape(1, -1)
    b2f = jnp.asarray(b2, jnp.float32).reshape(1, -1)

    # Layer 1.  Contraction order pinned: x@W1 first (N*384*16 flops), then
    # a_hat @ (x@W1) (N^2*16 flops).  Do NOT fuse/swap.
    xw1 = _transform(xb, w1b, tm=tm, out_dtype=jnp.bfloat16)              # [N,16]
    h1 = _propagate(ab, xw1, b1f, tm=tm, tk=tk,
                    epilogue="relu", out_dtype=jnp.bfloat16)              # [N,16]

    # Dropout: inference (training=False) => identity.
    # TODO(synk): training-mode dropout would need pltpu.prng_seed/prng_random_bits.

    # Layer 2 + log_softmax(dim=1) fused into the propagation epilogue.
    xw2 = _transform(h1, w2b, tm=tm, out_dtype=jnp.bfloat16)              # [N,2]
    out = _propagate(ab, xw2, b2f, tm=tm, tk=tk,
                     epilogue="log_softmax", out_dtype=jnp.float32)       # [N,2]
    return out[:n]


def build_normalized_adj(edge_index, num_nodes):
    """a_hat = D^-1/2 (A + I) D^-1/2  (PyG GCNConv default normalization).
    Note: duplicate edges in edge_index are summed (message counted twice)."""
    src = edge_index[0]
    dst = edge_index[1]
    a = jnp.zeros((num_nodes, num_nodes), jnp.float32)
    a = a.at[dst, src].add(1.0)                     # message src -> dst
    a = a + jnp.eye(num_nodes, dtype=jnp.float32)   # self-loops
    deg = jnp.sum(a, axis=1)
    d_inv_sqrt = jnp.where(deg > 0, 1.0 / jnp.sqrt(deg), 0.0)
    return a * d_inv_sqrt[:, None] * d_inv_sqrt[None, :]


def gcn_reference(x, a, w1, b1, w2, b2):
    """Pure-JAX reference replicating the kernel's bf16 operand rounding."""
    bf = jnp.bfloat16
    xw1 = jnp.dot(x.astype(bf), w1.astype(bf),
                  preferred_element_type=jnp.float32).astype(bf)
    h1 = jnp.maximum(
        jnp.dot(a.astype(bf), xw1, preferred_element_type=jnp.float32)
        + b1.reshape(1, -1), 0.0).astype(bf)
    xw2 = jnp.dot(h1, w2.astype(bf),
                  preferred_element_type=jnp.float32).astype(bf)
    h2 = (jnp.dot(a.astype(bf), xw2, preferred_element_type=jnp.float32)
          + b2.reshape(1, -1))
    return jax.nn.log_softmax(h2, axis=1)


if __name__ == "__main__":
    key = jax.random.PRNGKey(0)
    N, F_IN, F_HID, F_OUT = 256, 384, 16, 2

    k_x, k_w1, k_b1, k_w2, k_b2 = jax.random.split(key, 5)

    # node features
    x = jax.random.normal(k_x, (N, F_IN), jnp.float32)

    # bidirectional ring graph: edge_index [2, 2N]
    s = jnp.arange(N)
    d = (s + 1) % N
    edge_index = jnp.stack(
        [jnp.concatenate([s, d]), jnp.concatenate([d, s])], axis=0
    ).astype(jnp.int32)
    a_hat = build_normalized_adj(edge_index, N)

    # deterministic Glorot-uniform weights, small random biases
    lim1 = jnp.sqrt(6.0 / (F_IN + F_HID))
    w1 = jax.random.uniform(k_w1, (F_IN, F_HID), jnp.float32, -lim1, lim1)
    b1 = 0.1 * jax.random.normal(k_b1, (1, F_HID), jnp.float32)

    lim2 = jnp.sqrt(6.0 / (F_HID + F_OUT))
    w2 = jax.random.uniform(k_w2, (F_HID, F_OUT), jnp.float32, -lim2, lim2)
    b2 = 0.1 * jax.random.normal(k_b2, (1, F_OUT), jnp.float32)

    # Small tiles here so the demo exercises the tiled a_hat path: grid (2, 2).
    out = gcn_forward(x, a_hat, w1, b1, w2, b2, tm_target=128, tk_target=128)
    jax.block_until_ready(out)

    ref = gcn_reference(x, a_hat, w1, b1, w2, b2)

    assert out.shape == (N, F_OUT)
    # rows of log_softmax must exp-sum to 1
    assert jnp.allclose(jnp.sum(jnp.exp(out), axis=1), 1.0, atol=1e-5)
    # matches the bf16-operand / f32-accumulate reference
    assert jnp.allclose(out, ref, atol=1e-3, rtol=1e-3)
    print("KERNEL_OK")
</pallas_src>

<mosaic_0001>
module attributes {stable_mosaic.version = 11 : i64} {
  func.func @_transform_kernel(%arg0: i32, %arg1: memref<128x384xbf16, #tpu.memory_space<vmem>>, %arg2: memref<384x16xbf16, #tpu.memory_space<vmem>>, %arg3: memref<128x16xbf16, #tpu.memory_space<vmem>>) attributes {dimension_semantics = [#tpu.dimension_semantics<parallel>], iteration_bounds = array<i64: 2>, scalar_prefetch = 0 : i64, scratch_operands = 0 : i64, tpu.core_type = #tpu.core_type<tc>, window_params = [{transform_indices = @transform_0, window_bounds = array<i64: 128, 384>}, {pipeline_mode = #tpu.pipeline_mode<synchronous>, transform_indices = @transform_1, window_bounds = array<i64: 384, 16>}, {transform_indices = @transform_2, window_bounds = array<i64: 128, 16>}]} {
    %c0 = arith.constant 0 : index
    %c0_0 = arith.constant 0 : index
    %0 = vector.load %arg1[%c0, %c0_0] : memref<128x384xbf16, #tpu.memory_space<vmem>>, vector<128x384xbf16>
    %c0_1 = arith.constant 0 : index
    %c0_2 = arith.constant 0 : index
    %1 = vector.load %arg2[%c0_1, %c0_2] : memref<384x16xbf16, #tpu.memory_space<vmem>>, vector<384x16xbf16>
    %cst = arith.constant dense<0.000000e+00> : vector<128x16xf32>
    %2 = tpu.matmul %0, %1, %cst {dimension_numbers = #tpu.dot_dimension_numbers<[1], [0], [0], [1], [0, 0, 1, 1], [], []>} : vector<128x384xbf16>, vector<384x16xbf16>, vector<128x16xf32> -> vector<128x16xf32>
    %3 = arith.truncf %2 : vector<128x16xf32> to vector<128x16xbf16>
    %c0_3 = arith.constant 0 : index
    %c0_4 = arith.constant 0 : index
    %4 = vector.load %arg3[%c0_3, %c0_4] : memref<128x16xbf16, #tpu.memory_space<vmem>>, vector<128x16xbf16>
    tpu.vector_store %arg3[%c0_3, %c0_4], %3 {strides = array<i32>} : memref<128x16xbf16, #tpu.memory_space<vmem>>, vector<128x16xbf16>,
    return
  }
  func.func @transform_0(%arg0: i32) -> (i32, i32) {
    %c0_i32 = arith.constant 0 : i32
    %c0_i32_0 = arith.constant 0 : i32
    return %arg0, %c0_i32 : i32, i32
  }
  func.func @transform_1(%arg0: i32) -> (i32, i32) {
    %c0_i32 = arith.constant 0 : i32
    %c0_i32_0 = arith.constant 0 : i32
    %c0_i32_1 = arith.constant 0 : i32
    return %c0_i32, %c0_i32_0 : i32, i32
  }
  func.func @transform_2(%arg0: i32) -> (i32, i32) {
    %c0_i32 = arith.constant 0 : i32
    %c0_i32_0 = arith.constant 0 : i32
    return %arg0, %c0_i32 : i32, i32
  }
}

</mosaic_0001>

<bundles_post_ra>
// kernel: tpu_custom_call.1
= control target key start
LH: loop header
LB: loop body
LE: loop exit
PB: predicated region body
PF: predicated region fallthrough
CT: control target
= control target key end

     0   :  { %7 = vsyncpa [#allocation3], 0  ;;  %s1489_s0 = inlined_call_operand.hbm [shape: bf16[256,384], index: 0, kind: input, shape index: {}]   ;;  %s1490_s1 = inlined_call_operand.vmem [shape: bf16[384,16], index: 1, kind: input, shape index: {}]   ;;  %s1491_s2 = inlined_call_operand.vmem [shape: bf16[256,16], index: 2, kind: output, shape index: {}]  }
   0x1   :  { %9 = vsyncpa [#allocation3 + $0x1], 0  ;;  %s1250_s9 = smov 0   ;;  %s1252_s10 = smov 0  }
   0x2   :  { %s1254_s11 = smov 0   ;;  %s1256_s12 = smov 0  }
   0x3 LB: > { %s862_s13 = sadd.s32 4294967295, %s1230_s12   ;;  %s1270_s14 = sadd.s32 1, %s1230_s12   ;;  %s1230_s12 = sphi %s1256_s12, %s1498_s12   ;;  %s1226_s11 = sphi %s1254_s11, %s1497_s11   ;;  %s1222_s10 = sphi %s1252_s10, %s1496_s10   ;;  %s1218_s9 = sphi %s1250_s9, %s1495_s9  }
   0x4   : > { %s19_s15 = ssub.s32 %s1230_s12, %s1270_s14  ;;  %s22_s16 = sadd.s32 1, %s1226_s11 }
   0x5   : > { %p20_p0 = scmp.eq.s32.totalorder %s19_s15, 0  ;;  %p29_p1 = scmp.ne.s32.totalorder %s1226_s11, %s1222_s10 }
   0x6   : > { %p30_p2 = scmp.eq.s32.totalorder %s1230_s12, 0  ;;  %p35_p3 = scmp.ne.s32.totalorder %s1222_s10, %s1218_s9 }
   0x7   : > { %s1280_s17 = scalar_select %p20_p0, %s1226_s11, %s22_s16  }
   0x8   : > { %p31_p4 = por %p30_p2, %p29_p1  ;;  %p36_p5 = scmp.eq.s32.totalorder %s862_s13, 0 }
   0x9   : > { %p1075_p6 = scmp.lt.s32.totalorder %s1230_s12, 2  ;;  %s109_s19 = sand.u32 1, %s1226_s11  }
   0xa   : > { %p1285_p7 = por %p36_p5, %p35_p3  ;;  %s1066_s20 = smul.u32 192, %s109_s19 }
   0xb   : > { %s1067_s21 = smul.u32 3072, %s1230_s12  ;;  %p1291_p8 = pnand %p1075_p6, %p31_p4 }
   0xc   : > { %s113_s26 = scalar_lea.vmem [#allocation2], %s1066_s20  ;;  %s1303_s28 = scalar_lea.sflag [#allocation3], %s109_s19 }
   0xd   : > { %s1298_s25 = scalar_lea.hbm %s1489_s0, %s1067_s21  ;;  %s121_s27 = sshll.u32 %s113_s26, 4  ;;  %s1300_s27 = int_to_ptr.vmem [resolvable:$true] %s121_s27 }
   0xe   : > { %s1166_s29 = scalar_lea.hbm %s1298_s25, 3072  ;;  %p1168_p11 = pneg %p1291_p8 }
   0xf   : > { %p1167_p10 = scmp.ne.s32.totalorder %s1298_s25, %s1166_s29  ;;  %s1171_s4 = scalar_lea.hbm %s1489_s0, 6144 }
  0x10   : > { %p1172_p0 = scmp.lt.u32.totalorder %s1298_s25, %s1489_s0  ;;  %p1173_p1 = scmp.lt.u32.totalorder %s1171_s4, %s1166_s29 }
  0x11   : > { %p1169_p12 = pnand %p1168_p11, %p1167_p10  ;;  %p1175_p3 = scmp.lt.u32.totalorder %s1166_s29, %s1298_s25 }
  0x12   : > { %p1174_p2 = por %p1173_p1, %p1172_p0 }
  0x13   : > { %p1170_p13 = pneg %p1169_p12 }
  0x14   : > { %p1176_p4 = por %p1175_p3, %p1174_p2 }
  0x16   : > { %p1177_p5 = pnand %p1176_p4, %p1170_p13 }
  0x18   : > { %1180 = shalt.err (!%p1177_p5)
}
  0x19   : > { %s1181_s7 = scalar_lea.vmem %s1300_s27, 3072  ;;  %s1232_s8 = smov [#allocation2]  }
  0x1a   : > { %p1182_p6 = scmp.ne.s32.totalorder %s1300_s27, %s1181_s7  ;;  %s1186_s9 = sshll.u32 %s1232_s8, 4  ;;  %s1187_s9 = int_to_ptr.vmem [resolvable:$false] %s1186_s9 }
  0x1b   : > { %s1188_s15 = scalar_lea.vmem %s1187_s9, 6144  ;;  %p1189_p9 = scmp.lt.s32.totalorder %s1300_s27, %s1187_s9 }
  0x1c   : > { %p1184_p10 = pnand %p1182_p6, %p1168_p11  ;;  %p1190_p0 = scmp.lt.s32.totalorder %s1188_s15, %s1181_s7 }
  0x1e   : > { %p1185_p12 = pneg %p1184_p10  ;;  %p1191_p1 = por %p1190_p0, %p1189_p9 }
  0x20   : > { %p1192_p2 = pnand %p1191_p1, %p1185_p12 }
  0x22   : > { %1195 = shalt.err (!%p1192_p2)
}
  0x23   : > { %s1233_s16 = smov 192   ;;  %s1234_s19 = smov 12  }
  0x24   : > { %1074 = dma.hbm_to_vmem [thread:$0]  (!%p1291_p8), %s1298_s25, 3072, %s1300_s27, %s1303_s28, %s1233_s16, %s1233_s16, %s1234_s19  }
  0x25   : > { %p129_p11 = scmp.lt.s32.totalorder %s1230_s12, 3  ;;  %p1494_p13 = scmp.ge.s32.totalorder %s1230_s12, 1 }
  0x27   : > { %p130_p3 = pnand %p1494_p13, %p129_p11 }
  0x28   : > { %s135_s20 = sand.u32 (!%p130_p3), 1, %s1222_s10  }
  0x29   : > { %133 = sbr.rel (%p130_p3) target bundleno = 360 (0x168), region = 28  ;;  %s136_s23 = scalar_lea.sflag (!%p130_p3), [#allocation3], %s135_s20 }
  0x2a   : > { %s1068_s21 = smul.u32 (!%p130_p3), 192, %s135_s20 }
  0x2c   : > { %s1335_s24 = scalar_lea.vmem (!%p130_p3), [#allocation2], %s1068_s21 }
  0x30   : > { %1213 = dma.done.wait (%p1285_p7), %s136_s23, 3072  }
  0x31   : > { %1215 = vsyncadd (%p1285_p7), %s136_s23, 4294964224  ;;  %v1110_v0 = vld [vmem:[%s1490_s1 + $0x40] sm:$0xff]   ;;  %v1113_v3 = vld [vmem:[%s1490_s1 + $0x48] sm:$0xff]   ;;  %s870_s30 = sshll.u32 %s862_s13, 4  ;;  %vm778_vm0 = vcmask 125952  }
  0x32   : > { %v1111_v1 = vld [vmem:[%s1490_s1] sm:$0xff]   ;;  %954 = vmatprep.subr.bf16.mxu0 %v1110_v0  ;;  %v1114_v4 = vld [vmem:[%s1490_s1 + $0x8] sm:$0xff]   ;;  %v1116_v6 = vld [vmem:[%s1490_s1 + $0x50] sm:$0xff]   ;;  %p162_p7 = scmp.lt.s32.totalorder %s870_s30, 31 }
  0x33   : > { %v1112_v2 = vld [vmem:[%s1490_s1 + $0x80] sm:$0xff]   ;;  %955 = vmatpush3.bf16.msra.mxu0 %v1111_v1  ;;  %v1115_v5 = vld [vmem:[%s1490_s1 + $0x88] sm:$0xff]   ;;  %v1117_v7 = vld [vmem:[%s1490_s1 + $0x10] sm:$0xff]  }
  0x34   : > { %1034 = vmatprep.subr.bf16.mxu1 %v1112_v2  ;;  %956 = vmatprep.subr.bf16.mxu0 %v1113_v3  ;;  %v1118_v8 = vld [vmem:[%s1490_s1 + $0x90] sm:$0xff]   ;;  %v1119_v9 = vld [vmem:[%s1490_s1 + $0x58] sm:$0xff]   ;;  %v1122_v12 = vld [vmem:[%s1490_s1 + $0x60] sm:$0xff]   ;;  %s1500_s30 = smov (!%p162_p7, %s870_s30), 31 }
  0x35   : > { %1035 = vmatpush3.bf16.msra.mxu1 %v1112_v2  ;;  %v1120_v10 = vld [vmem:[%s1490_s1 + $0x18] sm:$0xff]   ;;  %v1124_v13 = vld [vmem:[%s1490_s1 + $0xa0] sm:$0xff]   ;;  %v1125_v15 = vld [vmem:[%s1490_s1 + $0x68] sm:$0xff]   ;;  %s871_s3 = sshll.u32 %s1500_s30, 2 }
  0x36   : > { %1036 = vmatprep.subr.bf16.mxu1 %v1115_v5  ;;  %v1121_v11 = vld [vmem:[%s1490_s1 + $0x98] sm:$0xff]   ;;  %v1123_v14 = vld [vmem:[%s1490_s1 + $0x20] sm:$0xff]   ;;  %v1127_v16 = vld [vmem:[%s1490_s1 + $0xa8] sm:$0xff]  }
  0x37   : > { %957 = vmatpush3.bf16.msra.mxu0 %v1114_v4  ;;  %v1126_v17 = vld [vmem:[%s1490_s1 + $0x28] sm:$0xff]   ;;  %v1128_v18 = vld [vmem:[%s1490_s1 + $0x70] sm:$0xff]   ;;  %v1131_v21 = vld [vmem:[%s1490_s1 + $0x78] sm:$0xff]  }
  0x38   : > { %958 = vmatprep.subr.bf16.mxu0 %v1116_v6  ;;  %v1129_v19 = vld [vmem:[%s1490_s1 + $0x30] sm:$0xff]   ;;  %v1133_v22 = vld [vmem:[%s1490_s1 + $0xb8] sm:$0xff]   ;;  %v1134_v26 = vld [vmem:[%s1335_s24] ss:$12 sps:$4 sm:$0xff]  }
  0x39   : > { %1037 = vmatpush3.bf16.msra.mxu1 %v1115_v5  ;;  %v1130_v20 = vld [vmem:[%s1490_s1 + $0xb0] sm:$0xff]   ;;  %v1132_v25 = vld [vmem:[%s1490_s1 + $0x38] sm:$0xff]   ;;  %v1138_v28 = vld [vmem:[%s1335_s24 + $0x20] ss:$12 sps:$4 sm:$0xff]  }
  0x3a   : > { %1038 = vmatprep.subr.bf16.mxu1 %v1118_v8  ;;  %v1136_v23 = vld [vmem:[%s1335_s24 + $0x4] ss:$12 sps:$4 sm:$0xff]   ;;  %v1137_v24 = vld [vmem:[%s1335_s24 + $0x8] ss:$12 sps:$4 sm:$0xff]   ;;  %v1147_v35 = vld [vmem:[%s1335_s24 + $0x4c] ss:$12 sps:$4 sm:$0xff]  }
  0x3b   : > { %959 = vmatpush3.bf16.msra.mxu0 %v1117_v7  ;;  %552 = vmatprep.mubr.bf16.mxu0 %v1136_v23  ;;  %v1139_v27 = vld [vmem:[%s1335_s24 + $0x1c] ss:$12 sps:$4 sm:$0xff]   ;;  %v1145_v29 = vld [vmem:[%s1335_s24 + $0x38] ss:$12 sps:$4 sm:$0xff]   ;;  %v1142_v31 = vld [vmem:[%s1335_s24 + $0x34] ss:$12 sps:$4 sm:$0xff]  }
  0x3c   : > { %960 = vmatprep.subr.bf16.mxu0 %v1119_v9  ;;  %1050 = vmatprep.mubr.bf16.mxu1 %v1137_v24  ;;  %v1141_v30 = vld [vmem:[%s1335_s24 + $0x18] ss:$12 sps:$4 sm:$0xff]   ;;  %v1146_v32 = vld [vmem:[%s1335_s24 + $0x50] ss:$12 sps:$4 sm:$0xff]   ;;  %v1153_v33 = vld [vmem:[%s1335_s24 + $0x68] ss:$12 sps:$4 sm:$0xff]  }
  0x3d   : > { %1039 = vmatpush3.bf16.msra.mxu1 %v1118_v8  ;;  %v1144_v34 = vld [vmem:[%s1335_s24 + $0x30] ss:$12 sps:$4 sm:$0xff]   ;;  %v1154_v36 = vld [vmem:[%s1335_s24 + $0x80] ss:$12 sps:$4 sm:$0xff]   ;;  %v1161_v37 = vld [vmem:[%s1335_s24 + $0x98] ss:$12 sps:$4 sm:$0xff]  }
  0x3e   : > { %1040 = vmatprep.subr.bf16.mxu1 %v1121_v11  ;;  %v1149_v38 = vld [vmem:[%s1335_s24 + $0x48] ss:$12 sps:$4 sm:$0xff]   ;;  %v1150_v39 = vld [vmem:[%s1335_s24 + $0x64] ss:$12 sps:$4 sm:$0xff]   ;;  %v1152_v41 = vld [vmem:[%s1335_s24 + $0x60] ss:$12 sps:$4 sm:$0xff]  }
  0x3f   : > { %961 = vmatpush3.bf16.msra.mxu0 %v1120_v10  ;;  %v1162_v40 = vld [vmem:[%s1335_s24 + $0xb0] ss:$12 sps:$4 sm:$0xff]   ;;  %v1157_v43 = vld [vmem:[%s1335_s24 + $0x78] ss:$12 sps:$4 sm:$0xff]   ;;  %v1158_v44 = vld [vmem:[%s1335_s24 + $0x94] ss:$12 sps:$4 sm:$0xff]  }
  0x40   : > { %962 = vmatprep.subr.bf16.mxu0 %v1122_v12  ;;  %v1155_v42 = vld [vmem:[%s1335_s24 + $0x7c] ss:$12 sps:$4 sm:$0xff]   ;;  %v1163_v46 = vld [vmem:[%s1335_s24 + $0xac] ss:$12 sps:$4 sm:$0xff]  }
  0x41   : > { %1041 = vmatpush3.bf16.msra.mxu1 %v1121_v11  ;;  %v1160_v45 = vld [vmem:[%s1335_s24 + $0x90] ss:$12 sps:$4 sm:$0xff]   ;;  %v1165_v47 = vld [vmem:[%s1335_s24 + $0xa8] ss:$12 sps:$4 sm:$0xff]   ;;  %s1442_s24 = scalar_lea.vmem %s1491_s2, %s871_s3 }
  0x42   : > { %1042 = vmatprep.subr.bf16.mxu1 %v1124_v13 }
  0x43   : > { %963 = vmatpush3.bf16.msra.mxu0 %v1123_v14 }
  0x44   : > { %964 = vmatprep.subr.bf16.mxu0 %v1125_v15 }
  0x45   : > { %1043 = vmatpush3.bf16.msra.mxu1 %v1124_v13 }
  0x46   : > { %1044 = vmatprep.subr.bf16.mxu1 %v1127_v16 }
  0x47   : > { %965 = vmatpush3.bf16.msra.mxu0 %v1126_v17 }
  0x48   : > { %966 = vmatprep.subr.bf16.mxu0 %v1128_v18 }
  0x49   : > { %1045 = vmatpush3.bf16.msra.mxu1 %v1127_v16 }
  0x4a   : > { %1046 = vmatprep.subr.bf16.mxu1 %v1130_v20 }
  0x4b   : > { %967 = vmatpush3.bf16.msra.mxu0 %v1129_v19 }
  0x4c   : > { %968 = vmatprep.subr.bf16.mxu0 %v1131_v21 }
  0x4d   : > { %1047 = vmatpush3.bf16.msra.mxu1 %v1130_v20 }
  0x4e   : > { %1048 = vmatprep.subr.bf16.mxu1 %v1133_v22 }
  0x4f   : > { %969 = vmatpush3.bf16.msra.mxu0 %v1132_v25 }
  0x51   : > { %1049 = vmatpush3.bf16.msra.mxu1 %v1133_v22 }
  0x52   : > { %553 = vmatmul.mubr.bf16.vlgmr.msra.gmra.mrb[0].mxu0 %v1134_v26 }
  0x53   : > { %560 = vmatprep.mubr.bf16.mxu0 %v1139_v27 }
  0x54   : > { %1051 = vmatmul.mubr.bf16.vlgmr.msra.gmra.mrb[0].mxu1 %v1138_v28 }
  0x55   : > { %1054 = vmatprep.mubr.bf16.mxu1 %v1145_v29 }
  0x5a   : > { %561 = vmatmul.mubr.bf16.gmra.mrb[4].mxu0 %v1141_v30 }
  0x5b   : > { %568 = vmatprep.mubr.bf16.mxu0 %v1142_v31 }
  0x5c   : > { %1055 = vmatmul.mubr.bf16.gmra.mrb[4].mxu1 %v1146_v32 }
  0x5d   : > { %1058 = vmatprep.mubr.bf16.mxu1 %v1153_v33 }
  0x62   : > { %569 = vmatmul.mubr.bf16.gmra.mrb[8].mxu0 %v1144_v34 }
  0x63   : > { %576 = vmatprep.mubr.bf16.mxu0 %v1147_v35 }
  0x64   : > { %1059 = vmatmul.mubr.bf16.gmra.mrb[8].mxu1 %v1154_v36 }
  0x65   : > { %1062 = vmatprep.mubr.bf16.mxu1 %v1161_v37 }
  0x6a   : > { %577 = vmatmul.mubr.bf16.gmra.mrb[12].mxu0 %v1149_v38 }
  0x6b   : > { %584 = vmatprep.mubr.bf16.mxu0 %v1150_v39 }
  0x6c   : > { %1063 = vmatmul.mubr.bf16.gmra.mrb[12].mxu1 %v1162_v40 }
  0x72   : > { %585 = vmatmul.mubr.bf16.gmra.mrb[16].mxu0 %v1152_v41 }
  0x73   : > { %592 = vmatprep.mubr.bf16.mxu0 %v1155_v42 }
  0x7a   : > { %593 = vmatmul.mubr.bf16.gmra.mrb[20].mxu0 %v1157_v43 }
  0x7b   : > { %600 = vmatprep.mubr.bf16.mxu0 %v1158_v44 }
  0x82   : > { %601 = vmatmul.mubr.bf16.gmra.mrb[24].mxu0 %v1160_v45 }
  0x83   : > { %608 = vmatprep.mubr.bf16.mxu0 %v1163_v46 }
  0x8a   : > { %609 = vmatmul.mubr.bf16.gmra.mrb[28].mxu0 %v1165_v47 }
 0x125   : > { %v970_v48 = vpop.f32.mrb[0].mxu0 }
 0x126   : > { %v971_v49 = vpop.f32.mrb[1].mxu0 }
 0x127   : > { %v972_v50 = vadd.f32 %v971_v49, %v970_v48  ;;  %v973_v51 = vpop.f32.mrb[2].mxu0  ;;  %v1052_v52 = vpop.f32.mrb[0].mxu1 }
 0x128   : > { %v974_v53 = vpop.f32.mrb[3].mxu0  ;;  %v651_v54 = vpop.f32.mrb[1].mxu1 }
 0x129   : > { %v975_v55 = vadd.f32 %v974_v53, %v973_v51  ;;  %v652_v56 = vadd.f32 %v972_v50, %v651_v54  ;;  %v1053_v57 = vpop.f32.mrb[2].mxu1 }
 0x12a   : > { %v654_v58 = vpop.f32.mrb[3].mxu1 }
 0x12b   : > { %v938_v59 = vpack.c.bf16 %v652_v56, %v652_v56  ;;  %v655_v60 = vadd.f32 %v975_v55, %v654_v58 }
 0x12d   : > { %779 = vst.msk [vmem:[%s1442_s24] sm:$0xf] %vm778_vm0, %v938_v59  ;;  %v939_v61 = vpack.c.bf16 %v655_v60, %v655_v60  ;;  %v976_v62 = vpop.f32.mrb[4].mxu0 }
 0x12e   : > { %v977_v63 = vpop.f32.mrb[5].mxu0 }
 0x12f   : > { %780 = vst.msk [vmem:[%s1442_s24 + $0x4] sm:$0xf] %vm778_vm0, %v939_v61  ;;  %v978_v0 = vadd.f32 %v977_v63, %v976_v62  ;;  %v979_v1 = vpop.f32.mrb[6].mxu0  ;;  %v1056_v2 = vpop.f32.mrb[4].mxu1 }
 0x130   : > { %v980_v3 = vpop.f32.mrb[7].mxu0  ;;  %v667_v4 = vpop.f32.mrb[5].mxu1 }
 0x131   : > { %v660_v5 = vadd.f32 %v1052_v52, %v978_v0  ;;  %v981_v6 = vadd.f32 %v980_v3, %v979_v1  ;;  %v1057_v7 = vpop.f32.mrb[6].mxu1 }
 0x132   : > { %v670_v8 = vpop.f32.mrb[7].mxu1 }
 0x133   : > { %v940_v9 = vpack.c.bf16 %v660_v5, %v660_v5  ;;  %v663_v10 = vadd.f32 %v1053_v57, %v981_v6 }
 0x135   : > { %781 = vst.msk [vmem:[%s1442_s24 + $0x8] sm:$0xf] %vm778_vm0, %v940_v9  ;;  %v941_v11 = vpack.c.bf16 %v663_v10, %v663_v10  ;;  %v982_v12 = vpop.f32.mrb[8].mxu0 }
 0x136   : > { %v983_v13 = vpop.f32.mrb[9].mxu0 }
 0x137   : > { %782 = vst.msk [vmem:[%s1442_s24 + $0xc] sm:$0xf] %vm778_vm0, %v941_v11  ;;  %v984_v14 = vadd.f32 %v983_v13, %v982_v12  ;;  %v985_v15 = vpop.f32.mrb[10].mxu0  ;;  %v1060_v16 = vpop.f32.mrb[8].mxu1 }
 0x138   : > { %v986_v17 = vpop.f32.mrb[11].mxu0  ;;  %v683_v18 = vpop.f32.mrb[9].mxu1 }
 0x139   : > { %v987_v19 = vadd.f32 %v986_v17, %v985_v15  ;;  %v668_v20 = vadd.f32 %v984_v14, %v667_v4  ;;  %v1061_v21 = vpop.f32.mrb[10].mxu1 }
 0x13a   : > { %v686_v22 = vpop.f32.mrb[11].mxu1 }
 0x13b   : > { %v942_v23 = vpack.c.bf16 %v668_v20, %v668_v20  ;;  %v671_v24 = vadd.f32 %v987_v19, %v670_v8 }
 0x13d   : > { %783 = vst.msk [vmem:[%s1442_s24 + $0x10] sm:$0xf] %vm778_vm0, %v942_v23  ;;  %v943_v25 = vpack.c.bf16 %v671_v24, %v671_v24  ;;  %v988_v26 = vpop.f32.mrb[12].mxu0 }
 0x13e   : > { %v989_v27 = vpop.f32.mrb[13].mxu0 }
 0x13f   : > { %784 = vst.msk [vmem:[%s1442_s24 + $0x14] sm:$0xf] %vm778_vm0, %v943_v25  ;;  %v990_v28 = vadd.f32 %v989_v27, %v988_v26  ;;  %v991_v29 = vpop.f32.mrb[14].mxu0  ;;  %v1064_v30 = vpop.f32.mrb[12].mxu1 }
 0x140   : > { %v992_v31 = vpop.f32.mrb[15].mxu0  ;;  %v699_v32 = vpop.f32.mrb[13].mxu1 }
 0x141   : > { %v676_v33 = vadd.f32 %v1056_v2, %v990_v28  ;;  %v993_v34 = vadd.f32 %v992_v31, %v991_v29  ;;  %v1065_v35 = vpop.f32.mrb[14].mxu1 }
 0x142   : > { %v702_v36 = vpop.f32.mrb[15].mxu1 }
 0x143   : > { %v944_v37 = vpack.c.bf16 %v676_v33, %v676_v33  ;;  %v679_v38 = vadd.f32 %v1057_v7, %v993_v34 }
 0x145   : > { %785 = vst.msk [vmem:[%s1442_s24 + $0x18] sm:$0xf] %vm778_vm0, %v944_v37  ;;  %v945_v39 = vpack.c.bf16 %v679_v38, %v679_v38  ;;  %v994_v40 = vpop.f32.mrb[16].mxu0 }
 0x146   : > { %v995_v41 = vpop.f32.mrb[17].mxu0 }
 0x147   : > { %786 = vst.msk [vmem:[%s1442_s24 + $0x1c] sm:$0xf] %vm778_vm0, %v945_v39  ;;  %v996_v42 = vadd.f32 %v995_v41, %v994_v40  ;;  %v997_v43 = vpop.f32.mrb[18].mxu0 }
 0x148   : > { %v998_v44 = vpop.f32.mrb[19].mxu0 }
 0x149   : > { %v999_v45 = vadd.f32 %v998_v44, %v997_v43  ;;  %v684_v46 = vadd.f32 %v996_v42, %v683_v18 }
 0x14b   : > { %v946_v47 = vpack.c.bf16 %v684_v46, %v684_v46  ;;  %v687_v48 = vadd.f32 %v999_v45, %v686_v22 }
 0x14d   : > { %787 = vst.msk [vmem:[%s1442_s24 + $0x20] sm:$0xf] %vm778_vm0, %v946_v47  ;;  %v947_v49 = vpack.c.bf16 %v687_v48, %v687_v48  ;;  %v1000_v50 = vpop.f32.mrb[20].mxu0 }
 0x14e   : > { %v1001_v51 = vpop.f32.mrb[21].mxu0 }
 0x14f   : > { %788 = vst.msk [vmem:[%s1442_s24 + $0x24] sm:$0xf] %vm778_vm0, %v947_v49  ;;  %v1002_v52 = vadd.f32 %v1001_v51, %v1000_v50  ;;  %v1003_v53 = vpop.f32.mrb[22].mxu0 }
 0x150   : > { %v1004_v54 = vpop.f32.mrb[23].mxu0 }
 0x151   : > { %v692_v55 = vadd.f32 %v1060_v16, %v1002_v52  ;;  %v1005_v56 = vadd.f32 %v1004_v54, %v1003_v53 }
 0x153   : > { %v948_v57 = vpack.c.bf16 %v692_v55, %v692_v55  ;;  %v695_v58 = vadd.f32 %v1061_v21, %v1005_v56 }
 0x155   : > { %789 = vst.msk [vmem:[%s1442_s24 + $0x28] sm:$0xf] %vm778_vm0, %v948_v57  ;;  %v949_v59 = vpack.c.bf16 %v695_v58, %v695_v58  ;;  %v1006_v60 = vpop.f32.mrb[24].mxu0 }
 0x156   : > { %v1007_v61 = vpop.f32.mrb[25].mxu0 }
 0x157   : > { %790 = vst.msk [vmem:[%s1442_s24 + $0x2c] sm:$0xf] %vm778_vm0, %v949_v59  ;;  %v1008_v62 = vadd.f32 %v1007_v61, %v1006_v60  ;;  %v1009_v63 = vpop.f32.mrb[26].mxu0 }
 0x158   : > { %v1010_v0 = vpop.f32.mrb[27].mxu0 }
 0x159   : > { %v1011_v1 = vadd.f32 %v1010_v0, %v1009_v63  ;;  %v700_v2 = vadd.f32 %v1008_v62, %v699_v32 }
 0x15b   : > { %v950_v3 = vpack.c.bf16 %v700_v2, %v700_v2  ;;  %v703_v4 = vadd.f32 %v1011_v1, %v702_v36 }
 0x15d   : > { %791 = vst.msk [vmem:[%s1442_s24 + $0x30] sm:$0xf] %vm778_vm0, %v950_v3  ;;  %v951_v5 = vpack.c.bf16 %v703_v4, %v703_v4  ;;  %v1012_v6 = vpop.f32.mrb[28].mxu0 }
 0x15e   : > { %v1013_v7 = vpop.f32.mrb[29].mxu0 }
 0x15f   : > { %792 = vst.msk [vmem:[%s1442_s24 + $0x34] sm:$0xf] %vm778_vm0, %v951_v5  ;;  %v1014_v8 = vadd.f32 %v1013_v7, %v1012_v6  ;;  %v1015_v9 = vpop.f32.mrb[30].mxu0 }
 0x160   : > { %v1016_v10 = vpop.f32.mrb[31].mxu0 }
 0x161   : > { %v708_v11 = vadd.f32 %v1064_v30, %v1014_v8  ;;  %v1017_v12 = vadd.f32 %v1016_v10, %v1015_v9 }
 0x163   : > { %v952_v13 = vpack.c.bf16 %v708_v11, %v708_v11  ;;  %v711_v14 = vadd.f32 %v1065_v35, %v1017_v12 }
 0x165   : > { %793 = vst.msk [vmem:[%s1442_s24 + $0x38] sm:$0xf] %vm778_vm0, %v952_v13  ;;  %v953_v15 = vpack.c.bf16 %v711_v14, %v711_v14 }
 0x167   : > { %794 = vst.msk [vmem:[%s1442_s24 + $0x3c] sm:$0xf] %vm778_vm0, %v953_v15 }
 0x168 PF: > { %p12_p8 = scmp.ge.s32.totalorder %s1270_s14, 4   ;;  %s1495_s9 = smov %s1222_s10 }
 0x169   : > { %s1496_s10 = smov %s1226_s11  ;;  %s1497_s11 = smov %s1280_s17 }
 0x16a   : > { %s1498_s12 = smov %s1270_s14  ;;  %14 = sbr.rel (!%p12_p8) target bundleno = 3 (0x3), region = 68 }
 0x171   :  { %817 = vsyncpa [#allocation3], 1 }
 0x172   :  { %819 = vsyncpa [#allocation3 + $0x1], 1 }

</bundles_post_ra>
